<compile_context>
chip_gen: v7x
topology: tpu7x:2x2x1
jax: 0.10.0
libtpu: 0.0.40
codegen_flags: <defaults>
</compile_context>

<pallas_src>
import functools

import jax
import jax.numpy as jnp
from jax import lax
from jax.experimental import pallas as pl
from jax.experimental.pallas import tpu as pltpu

COMPUTE_DTYPE = jnp.float32      # bf16 on v6e/v7x for ~2x MXU rate (loosen tolerances)
_HALO = 8                        # sublane-aligned halo rows (>= Q-1 for K<=15, s>=2)
_VMEM_LIMIT = 48 * 1024 * 1024   # explicit scoped-VMEM limit (< physical on all gens)
_WINDOW_BUDGET = 4 << 20         # per-pipeline-buffer bound for the f32 input window


def _round_up(x, m):
    return ((x + m - 1) // m) * m


def _pick_tile(l_out, lane_width, max_tile_m):
    """Output-row tile: single tile if it fits, else a multiple of 128 (required
    for the lane-dense NCW feature block), bounded so one f32 input-window
    pipeline buffer stays under _WINDOW_BUDGET bytes (VMEM is L-independent)."""
    budget_rows = max(128, (_WINDOW_BUDGET // (lane_width * 4)) // 128 * 128)
    cap = min(max_tile_m, budget_rows)
    if l_out <= cap:
        return _round_up(l_out, 8)
    return max(128, (cap // 128) * 128)


# ------------------------------ Pallas kernels -------------------------------

def _conv_layer_kernel(xm_ref, xh_ref, wkc_ref, wck_ref, brow_ref, bcol_ref,
                       y_ref, f_ref, *, q_taps, apply_silu):
    """One strided Conv1d layer tile (fused taps, dual-orientation outputs).

    xm_ref : (tile_m, s*Cin)   window rows [t*tile_m, t*tile_m + tile_m)
    xh_ref : (_HALO, s*Cin)    halo rows   [t*tile_m + tile_m, ... + _HALO)
    wkc_ref: (Q*s*Cin, Cout)   resident fused-tap weights
    wck_ref: (Cout, Q*s*Cin)   same weights, transposed (for the NCW dot)
    brow   : (1, Cout)   bcol : (Cout, 1)
    y_ref  : (tile_m, Cout)    NLC pre-activation (consumed by the next layer)
    f_ref  : (Cout, tile_m)    NCW feature (torch API layout; lane-dense store)
    """
    tm = y_ref.shape[0]
    win = jnp.concatenate([xm_ref[...], xh_ref[...]], axis=0).astype(jnp.float32)
    if apply_silu:                       # SiLU of previous layer's pre-activation,
        win = win * jax.nn.sigmoid(win)  # applied once (not per tap); SiLU(0) = 0.

    # In-VMEM im2col: Q shifted row-slices concatenated along lanes -> a single
    # matmul with contraction K = Q*s*Cin instead of Q tiny accumulating dots.
    parts = [win[q:q + tm, :] for q in range(q_taps)]
    xcat = parts[0] if q_taps == 1 else jnp.concatenate(parts, axis=1)
    xcat = xcat.astype(COMPUTE_DTYPE)

    pre = jnp.dot(xcat, wkc_ref[...], preferred_element_type=jnp.float32)
    y_ref[...] = pre + brow_ref[...]

    # Same product in (Cout, tile_m) orientation straight from the MXU (cheap at
    # these shapes) -> lane-dense NCW feature store, no separate transpose pass.
    feat = lax.dot_general(wck_ref[...], xcat, (((1,), (1,)), ((), ())),
                           preferred_element_type=jnp.float32)
    f_ref[...] = feat + bcol_ref[...]


def _final_conv_mean_kernel(x_ref, w_ref, b_ref, y_ref, score_ref, *, inv_count):
    """Fused SiLU -> 1x1 Conv1d -> (feature tile, running score mean).

    x_ref     : (tile_m, C)        previous pre-activation tile (zero row-padded)
    w_ref     : (C, out_size)      resident
    b_ref     : (1, out_size)      resident
    y_ref     : (tile_m, out_size) final conv output tile (a feature)
    score_ref : (1, 1)             per-batch mean accumulator (bias-free part)
    """
    t = pl.program_id(1)
    h = x_ref[...].astype(jnp.float32)
    h = h * jax.nn.sigmoid(h)            # SiLU; zero-padded tail rows stay 0
    d = jnp.dot(h.astype(COMPUTE_DTYPE), w_ref[...],
                preferred_element_type=jnp.float32)
    y_ref[...] = d + b_ref[...]

    @pl.when(t == 0)
    def _():
        score_ref[...] = jnp.zeros_like(score_ref)

    part = jnp.sum(d, axis=0, keepdims=True)      # (1, out_size)
    part = jnp.sum(part, axis=1, keepdims=True)   # (1, 1)
    score_ref[...] = score_ref[...] + part * inv_count


# --------------------------------- wrappers -----------------------------------

def conv1d_layer(x_nlc, weight, bias, *, stride, pad, apply_silu, max_tile_m=1024):
    """Strided Conv1d (channels-last input).

    Returns (pre-activation (N, L_out, Cout) NLC, feature (N, Cout, L_out) NCW).
    SiLU of the *input* is applied in-kernel when apply_silu=True.
    """
    N, L, Cin = x_nlc.shape
    Cout, _, K = weight.shape
    s = int(stride)
    L_out = (L + 2 * pad - K) // s + 1
    Q = -(-K // s)                    # ceil(K / s)
    K_pad = Q * s
    s_cin = s * Cin

    tile_m = _pick_tile(L_out, s_cin, max_tile_m)
    num_tiles = -(-L_out // tile_m)
    L_out_pad = num_tiles * tile_m
    tph = tile_m // _HALO             # halo block-index stride

    # Zero-pad + phase-reshape: (N, R2*s, Cin) -> (N, R2, s*Cin).  Row j holds
    # padded positions [j*s, j*s + s - 1], so conv tap k = q*s + r becomes the
    # row-offset-q slice of the per-tile window.
    # TODO(synk): fuse this pad (and the producing layer's tail) into the
    # producer kernel to drop one activation HBM pass per layer.
    R2 = L_out_pad + _HALO
    right_pad = R2 * s - pad - L
    assert right_pad >= 0, "time padding bookkeeping error"
    xp = jnp.pad(x_nlc.astype(jnp.float32), ((0, 0), (pad, right_pad), (0, 0)))
    x2 = xp.reshape(N, R2, s_cin)

    # Fused-tap weights: (Cout, Cin, K) -> (Q*s*Cin, Cout); taps K..K_pad-1 zero.
    w_pad = jnp.pad(weight.astype(jnp.float32), ((0, 0), (0, 0), (0, K_pad - K)))
    w_kc = jnp.transpose(w_pad, (2, 1, 0)).reshape(Q * s_cin, Cout).astype(COMPUTE_DTYPE)
    w_ck = w_kc.T
    b_row = bias.reshape(1, Cout).astype(jnp.float32)
    b_col = bias.reshape(Cout, 1).astype(jnp.float32)

    kernel = functools.partial(_conv_layer_kernel, q_taps=Q, apply_silu=apply_silu)
    y_pad, f_pad = pl.pallas_call(
        kernel,
        grid=(N, num_tiles),
        in_specs=[
            pl.BlockSpec((None, tile_m, s_cin), lambda n, t: (n, t, 0)),            # window
            pl.BlockSpec((None, _HALO, s_cin), lambda n, t: (n, (t + 1) * tph, 0)),  # halo
            pl.BlockSpec((Q * s_cin, Cout), lambda n, t: (0, 0)),                   # resident
            pl.BlockSpec((Cout, Q * s_cin), lambda n, t: (0, 0)),                   # resident
            pl.BlockSpec((1, Cout), lambda n, t: (0, 0)),
            pl.BlockSpec((Cout, 1), lambda n, t: (0, 0)),
        ],
        out_specs=(
            pl.BlockSpec((None, tile_m, Cout), lambda n, t: (n, t, 0)),             # NLC
            pl.BlockSpec((None, Cout, tile_m), lambda n, t: (n, 0, t)),             # NCW feat
        ),
        out_shape=(
            jax.ShapeDtypeStruct((N, L_out_pad, Cout), jnp.float32),
            jax.ShapeDtypeStruct((N, Cout, L_out_pad), jnp.float32),
        ),
        compiler_params=pltpu.CompilerParams(
            dimension_semantics=("parallel", "parallel"),
            vmem_limit_bytes=_VMEM_LIMIT),
    )(x2, x2, w_kc, w_ck, b_row, b_col)
    return y_pad[:, :L_out, :], f_pad[:, :, :L_out]


def final_conv_and_score(h_nlc, weight, bias, *, max_tile_m=1024):
    """Fused SiLU -> 1x1 conv -> (final NCW feature (N, out_size, L), score (N,))."""
    N, L, C = h_nlc.shape
    out_size, _, K = weight.shape
    assert K == 1

    tile_m = _pick_tile(L, C, max_tile_m)
    num_tiles = -(-L // tile_m)
    L_pad = num_tiles * tile_m

    xp = jnp.pad(h_nlc.astype(jnp.float32), ((0, 0), (0, L_pad - L), (0, 0)))
    w2 = weight[:, :, 0].T.astype(COMPUTE_DTYPE)          # (C, out_size)
    b2 = bias.reshape(1, out_size).astype(jnp.float32)

    kernel = functools.partial(_final_conv_mean_kernel,
                               inv_count=1.0 / float(L * out_size))
    y_pad, score_acc = pl.pallas_call(
        kernel,
        grid=(N, num_tiles),
        in_specs=[
            pl.BlockSpec((None, tile_m, C), lambda n, t: (n, t, 0)),
            pl.BlockSpec((C, out_size), lambda n, t: (0, 0)),
            pl.BlockSpec((1, out_size), lambda n, t: (0, 0)),
        ],
        out_specs=(
            pl.BlockSpec((None, tile_m, out_size), lambda n, t: (n, t, 0)),
            pl.BlockSpec((None, 1, 1), lambda n, t: (n, 0, 0)),   # resident accumulator
        ),
        out_shape=(
            jax.ShapeDtypeStruct((N, L_pad, out_size), jnp.float32),
            jax.ShapeDtypeStruct((N, 1, 1), jnp.float32),
        ),
        compiler_params=pltpu.CompilerParams(
            # The score accumulator block is constant across the row-tile axis,
            # so that axis must stay "arbitrary" (sequential reduction).
            dimension_semantics=("parallel", "arbitrary"),
            vmem_limit_bytes=_VMEM_LIMIT),
    )(xp, w2, b2)

    # Final feature is tiny (out_size channels): host-side NCW transpose is cheap.
    y_ncw = jnp.transpose(y_pad[:, :L, :], (0, 2, 1))
    # mean(final) = mean(bias-free part) + mean(bias)
    score = score_acc[:, 0, 0] + jnp.mean(bias.astype(jnp.float32))
    return y_ncw, score


def shared_discriminator_convnet_forward(x_ncw, params, kernel_size, stride,
                                         *, max_tile_m=1024):
    """SharedDiscriminatorConvNet (Conv1d) forward.

    x_ncw: (N, Cin, L).  Returns (score (N,), features: list of NCW conv outputs).
    """
    h = jnp.transpose(x_ncw, (0, 2, 1)).astype(jnp.float32)   # NCW -> NLC once
    features = []
    pad = kernel_size // 2
    for i, (w, b) in enumerate(params[:-1]):
        # h carries the previous layer's pre-activation; SiLU is applied inside
        # the next kernel.  The NCW feature comes straight out of the kernel.
        h, feat = conv1d_layer(h, w, b, stride=stride, pad=pad,
                               apply_silu=(i > 0), max_tile_m=max_tile_m)
        features.append(feat)
    w, b = params[-1]
    feat_last, score = final_conv_and_score(h, w, b, max_tile_m=max_tile_m)
    features.append(feat_last)
    return score, features


# -------------------- MultiDiscriminator (host-side glue) ---------------------
# The dict packing / unpacking / summing of MultiDiscriminator is pure Python
# bookkeeping around the Pallas-backed discriminators (no kernel needed).

def _unpack_to_dict(x, keys):
    chunks = jnp.split(x, len(keys), axis=0)
    return {k: chunks[i] for i, k in enumerate(keys)}


def _concat_dicts(dict_a, dict_b):
    out = {}
    keys = list(dict_a.keys()) + [k for k in dict_b.keys() if k not in dict_a]
    for k in keys:
        out[k] = []
        if k in dict_a:
            if isinstance(dict_a[k], list):
                out[k].extend(dict_a[k])
            else:
                out[k].append(dict_a[k])
        if k in dict_b:
            if isinstance(dict_b[k], list):
                out[k].extend(dict_b[k])
            else:
                out[k].append(dict_b[k])
    return out


def _sum_dicts(dict_a, dict_b):
    out = {}
    for k in list(dict_a.keys()) + [k for k in dict_b.keys() if k not in dict_a]:
        out[k] = 0.0
        if k in dict_a:
            out[k] = out[k] + dict_a[k]
        if k in dict_b:
            out[k] = out[k] + dict_b[k]
    return out


def multi_discriminator_forward(inputs, keys, discriminators):
    disc_input = jnp.concatenate([inputs[k] for k in keys], axis=0)
    all_scores, all_features = [], []
    for disc in discriminators:
        score, features = disc(disc_input)
        scores = _unpack_to_dict(score, keys)
        scores = {f"score_{k}": scores[k] for k in scores}
        all_scores.append(scores)
        fdicts = [_unpack_to_dict(f, keys) for f in features]
        fdict = functools.reduce(_concat_dicts, fdicts)
        fdict = {f"features_{k}": fdict[k] for k in fdict}
        all_features.append(fdict)
    all_scores = functools.reduce(_sum_dicts, all_scores)
    all_features = functools.reduce(_concat_dicts, all_features)
    out = dict(inputs)
    out.update(all_scores)
    out.update(all_features)
    return out


# --------------------------- deterministic params -----------------------------

def init_convnet_params(key, in_size, out_size, capacity, n_layers, kernel_size):
    channels = [in_size] + [capacity * (2 ** i) for i in range(n_layers)]
    params = []
    for i in range(n_layers):
        key, k1, k2 = jax.random.split(key, 3)
        w = 0.05 * jax.random.normal(k1, (channels[i + 1], channels[i], kernel_size),
                                     jnp.float32)
        b = 0.05 * jax.random.normal(k2, (channels[i + 1],), jnp.float32)
        params.append((w, b))
    key, k1, k2 = jax.random.split(key, 3)
    w = 0.05 * jax.random.normal(k1, (out_size, channels[-1], 1), jnp.float32)
    b = 0.05 * jax.random.normal(k2, (out_size,), jnp.float32)
    params.append((w, b))
    return params


# ---------------------------- pure-JAX reference ------------------------------

def ref_convnet_forward(x, params, kernel_size, stride):
    feats = []
    h = x
    for (w, b) in params[:-1]:
        h = jax.lax.conv_general_dilated(
            h, w, (stride,), [(kernel_size // 2, kernel_size // 2)],
            dimension_numbers=("NCH", "OIH", "NCH")) + b[None, :, None]
        feats.append(h)
        h = jax.nn.silu(h)
    w, b = params[-1]
    h = jax.lax.conv_general_dilated(
        h, w, (1,), [(0, 0)],
        dimension_numbers=("NCH", "OIH", "NCH")) + b[None, :, None]
    feats.append(h)
    score = h.reshape(h.shape[0], -1).mean(-1)
    return score, feats


# ------------------------------------ main ------------------------------------

if __name__ == "__main__":
    # MultiDiscriminator over two Conv1d SharedDiscriminatorConvNets
    # (capacity=8, n_layers=2, kernel_size=15, strides 4 and 2), keys reals/fakes.
    KEYS = ("reals", "fakes")
    B, C_IN, L = 2, 2, 1024
    CAPACITY, N_LAYERS, KSIZE, OUT_SIZE = 8, 2, 15, 1
    STRIDES = (4, 2)
    # Test-only small tile so the multi-tile / halo path is exercised at toy L;
    # the production default (max_tile_m=1024) is used when not overridden.
    MAX_TILE_M = 128

    key = jax.random.PRNGKey(0)
    key, kr, kf = jax.random.split(key, 3)
    inputs = {
        "reals": jax.random.normal(kr, (B, C_IN, L), jnp.float32),
        "fakes": jax.random.normal(kf, (B, C_IN, L), jnp.float32),
    }

    disc_params = []
    for _ in STRIDES:
        key, kp = jax.random.split(key)
        disc_params.append(
            init_convnet_params(kp, C_IN, OUT_SIZE, CAPACITY, N_LAYERS, KSIZE))

    discriminators = [
        functools.partial(shared_discriminator_convnet_forward, params=p,
                          kernel_size=KSIZE, stride=s, max_tile_m=MAX_TILE_M)
        for p, s in zip(disc_params, STRIDES)
    ]

    out = multi_discriminator_forward(inputs, KEYS, discriminators)
    out = jax.tree_util.tree_map(jax.block_until_ready, out)

    # ------- correctness check against a pure-JAX (lax.conv) reference -------
    ref_discs = [
        functools.partial(ref_convnet_forward, params=p, kernel_size=KSIZE, stride=s)
        for p, s in zip(disc_params, STRIDES)
    ]
    ref = multi_discriminator_forward(inputs, KEYS, ref_discs)

    for k in KEYS:
        assert jnp.allclose(out[f"score_{k}"], ref[f"score_{k}"],
                            atol=1e-4, rtol=1e-3), f"score mismatch for {k}"
        fo, fr = out[f"features_{k}"], ref[f"features_{k}"]
        assert len(fo) == len(fr)
        for a, r in zip(fo, fr):
            assert a.shape == r.shape, (a.shape, r.shape)
            assert jnp.allclose(a, r, atol=1e-4, rtol=1e-3), f"feature mismatch for {k}"

    print("KERNEL_OK")
</pallas_src>

<mosaic_0001>
module attributes {stable_mosaic.version = 11 : i64} {
  func.func @_conv_layer_kernel(%arg0: i32, %arg1: i32, %arg2: memref<1x128x8xf32, #tpu.memory_space<vmem>>, %arg3: memref<1x8x8xf32, #tpu.memory_space<vmem>>, %arg4: memref<32x8xf32, #tpu.memory_space<vmem>>, %arg5: memref<8x32xf32, #tpu.memory_space<vmem>>, %arg6: memref<1x8xf32, #tpu.memory_space<vmem>>, %arg7: memref<8x1xf32, #tpu.memory_space<vmem>>, %arg8: memref<1x128x8xf32, #tpu.memory_space<vmem>>, %arg9: memref<1x8x128xf32, #tpu.memory_space<vmem>>) attributes {dimension_semantics = [#tpu.dimension_semantics<parallel>, #tpu.dimension_semantics<parallel>], iteration_bounds = array<i64: 4, 2>, scalar_prefetch = 0 : i64, scratch_operands = 0 : i64, tpu.core_type = #tpu.core_type<tc>, window_params = [{transform_indices = @transform_0, window_bounds = array<i64: 1, 128, 8>}, {transform_indices = @transform_1, window_bounds = array<i64: 1, 8, 8>}, {pipeline_mode = #tpu.pipeline_mode<synchronous>, transform_indices = @transform_2, window_bounds = array<i64: 32, 8>}, {pipeline_mode = #tpu.pipeline_mode<synchronous>, transform_indices = @transform_3, window_bounds = array<i64: 8, 32>}, {pipeline_mode = #tpu.pipeline_mode<synchronous>, transform_indices = @transform_4, window_bounds = array<i64: 1, 8>}, {pipeline_mode = #tpu.pipeline_mode<synchronous>, transform_indices = @transform_5, window_bounds = array<i64: 8, 1>}, {transform_indices = @transform_6, window_bounds = array<i64: 1, 128, 8>}, {transform_indices = @transform_7, window_bounds = array<i64: 1, 8, 128>}]} {
    %c0 = arith.constant 0 : index
    %c0_0 = arith.constant 0 : index
    %c0_1 = arith.constant 0 : index
    %0 = vector.load %arg2[%c0, %c0_0, %c0_1] : memref<1x128x8xf32, #tpu.memory_space<vmem>>, vector<1x128x8xf32>
    %1 = vector.shape_cast %0 : vector<1x128x8xf32> to vector<128x8xf32>
    %c0_2 = arith.constant 0 : index
    %c0_3 = arith.constant 0 : index
    %c0_4 = arith.constant 0 : index
    %2 = vector.load %arg3[%c0_2, %c0_3, %c0_4] : memref<1x8x8xf32, #tpu.memory_space<vmem>>, vector<1x8x8xf32>
    %3 = vector.shape_cast %2 : vector<1x8x8xf32> to vector<8x8xf32>
    %4 = tpu.concatenate %1, %3 in 0 : vector<128x8xf32>, vector<8x8xf32> -> vector<136x8xf32>
    %5 = vector.extract_strided_slice %4 {offsets = [0, 0], sizes = [128, 8], strides = [1, 1]} : vector<136x8xf32> to vector<128x8xf32>
    %6 = vector.extract_strided_slice %4 {offsets = [1, 0], sizes = [128, 8], strides = [1, 1]} : vector<136x8xf32> to vector<128x8xf32>
    %7 = vector.extract_strided_slice %4 {offsets = [2, 0], sizes = [128, 8], strides = [1, 1]} : vector<136x8xf32> to vector<128x8xf32>
    %8 = vector.extract_strided_slice %4 {offsets = [3, 0], sizes = [128, 8], strides = [1, 1]} : vector<136x8xf32> to vector<128x8xf32>
    %9 = tpu.concatenate %5, %6, %7, %8 in 1 : vector<128x8xf32>, vector<128x8xf32>, vector<128x8xf32>, vector<128x8xf32> -> vector<128x32xf32>
    %c0_5 = arith.constant 0 : index
    %c0_6 = arith.constant 0 : index
    %10 = vector.load %arg4[%c0_5, %c0_6] : memref<32x8xf32, #tpu.memory_space<vmem>>, vector<32x8xf32>
    %cst = arith.constant dense<0.000000e+00> : vector<128x8xf32>
    %11 = tpu.matmul %9, %10, %cst {dimension_numbers = #tpu.dot_dimension_numbers<[1], [0], [0], [1], [0, 0, 1, 1], [], []>} : vector<128x32xf32>, vector<32x8xf32>, vector<128x8xf32> -> vector<128x8xf32>
    %c0_7 = arith.constant 0 : index
    %c0_8 = arith.constant 0 : index
    %12 = vector.load %arg6[%c0_7, %c0_8] : memref<1x8xf32, #tpu.memory_space<vmem>>, vector<1x8xf32>
    %13 = vector.broadcast %12 : vector<1x8xf32> to vector<128x8xf32>
    %14 = arith.addf %11, %13 : vector<128x8xf32>
    %c0_9 = arith.constant 0 : index
    %c0_10 = arith.constant 0 : index
    %c0_11 = arith.constant 0 : index
    %15 = vector.load %arg8[%c0_9, %c0_10, %c0_11] : memref<1x128x8xf32, #tpu.memory_space<vmem>>, vector<1x128x8xf32>
    %16 = vector.shape_cast %15 : vector<1x128x8xf32> to vector<128x8xf32>
    %17 = vector.shape_cast %14 : vector<128x8xf32> to vector<1x128x8xf32>
    tpu.vector_store %arg8[%c0_9, %c0_10, %c0_11], %17 {strides = array<i32>} : memref<1x128x8xf32, #tpu.memory_space<vmem>>, vector<1x128x8xf32>,
    %c0_12 = arith.constant 0 : index
    %c0_13 = arith.constant 0 : index
    %18 = vector.load %arg5[%c0_12, %c0_13] : memref<8x32xf32, #tpu.memory_space<vmem>>, vector<8x32xf32>
    %cst_14 = arith.constant dense<0.000000e+00> : vector<8x128xf32>
    %19 = tpu.matmul %18, %9, %cst_14 {dimension_numbers = #tpu.dot_dimension_numbers<[1], [1], [0], [0], [0, 0, 1, 0], [], []>} : vector<8x32xf32>, vector<128x32xf32>, vector<8x128xf32> -> vector<8x128xf32>
    %c0_15 = arith.constant 0 : index
    %c0_16 = arith.constant 0 : index
    %20 = vector.load %arg7[%c0_15, %c0_16] : memref<8x1xf32, #tpu.memory_space<vmem>>, vector<8x1xf32>
    %21 = vector.broadcast %20 : vector<8x1xf32> to vector<8x128xf32>
    %22 = arith.addf %19, %21 : vector<8x128xf32>
    %c0_17 = arith.constant 0 : index
    %c0_18 = arith.constant 0 : index
    %c0_19 = arith.constant 0 : index
    %23 = vector.load %arg9[%c0_17, %c0_18, %c0_19] : memref<1x8x128xf32, #tpu.memory_space<vmem>>, vector<1x8x128xf32>
    %24 = vector.shape_cast %23 : vector<1x8x128xf32> to vector<8x128xf32>
    %25 = vector.shape_cast %22 : vector<8x128xf32> to vector<1x8x128xf32>
    tpu.vector_store %arg9[%c0_17, %c0_18, %c0_19], %25 {strides = array<i32>} : memref<1x8x128xf32, #tpu.memory_space<vmem>>, vector<1x8x128xf32>,
    return
  }
  func.func @transform_0(%arg0: i32, %arg1: i32) -> (i32, i32, i32) {
    %c0_i32 = arith.constant 0 : i32
    %c0_i32_0 = arith.constant 0 : i32
    return %arg0, %arg1, %c0_i32 : i32, i32, i32
  }
  func.func @transform_1(%arg0: i32, %arg1: i32) -> (i32, i32, i32) {
    %c1_i32 = arith.constant 1 : i32
    %0 = arith.addi %arg1, %c1_i32 : i32
    %c16_i32 = arith.constant 16 : i32
    %1 = arith.muli %0, %c16_i32 : i32
    %c0_i32 = arith.constant 0 : i32
    %c0_i32_0 = arith.constant 0 : i32
    return %arg0, %1, %c0_i32 : i32, i32, i32
  }
  func.func @transform_2(%arg0: i32, %arg1: i32) -> (i32, i32) {
    %c0_i32 = arith.constant 0 : i32
    %c0_i32_0 = arith.constant 0 : i32
    %c0_i32_1 = arith.constant 0 : i32
    return %c0_i32, %c0_i32_0 : i32, i32
  }
  func.func @transform_3(%arg0: i32, %arg1: i32) -> (i32, i32) {
    %c0_i32 = arith.constant 0 : i32
    %c0_i32_0 = arith.constant 0 : i32
    %c0_i32_1 = arith.constant 0 : i32
    return %c0_i32, %c0_i32_0 : i32, i32
  }
  func.func @transform_4(%arg0: i32, %arg1: i32) -> (i32, i32) {
    %c0_i32 = arith.constant 0 : i32
    %c0_i32_0 = arith.constant 0 : i32
    %c0_i32_1 = arith.constant 0 : i32
    return %c0_i32, %c0_i32_0 : i32, i32
  }
  func.func @transform_5(%arg0: i32, %arg1: i32) -> (i32, i32) {
    %c0_i32 = arith.constant 0 : i32
    %c0_i32_0 = arith.constant 0 : i32
    %c0_i32_1 = arith.constant 0 : i32
    return %c0_i32, %c0_i32_0 : i32, i32
  }
  func.func @transform_6(%arg0: i32, %arg1: i32) -> (i32, i32, i32) {
    %c0_i32 = arith.constant 0 : i32
    %c0_i32_0 = arith.constant 0 : i32
    return %arg0, %arg1, %c0_i32 : i32, i32, i32
  }
  func.func @transform_7(%arg0: i32, %arg1: i32) -> (i32, i32, i32) {
    %c0_i32 = arith.constant 0 : i32
    %c0_i32_0 = arith.constant 0 : i32
    return %arg0, %c0_i32, %arg1 : i32, i32, i32
  }
}

</mosaic_0001>

<bundles_post_ra>
// kernel: tpu_custom_call.1
= control target key start
LH: loop header
LB: loop body
LE: loop exit
PB: predicated region body
PF: predicated region fallthrough
CT: control target
= control target key end

     0   :  { %13 = vsyncpa [#allocation3], 0  ;;  %s2167_s0 = inlined_call_operand.vmem [shape: f32[4,264,8], index: 0, kind: input, shape index: {}]   ;;  %s2168_s1 = inlined_call_operand.vmem [shape: f32[4,264,8], index: 1, kind: input, shape index: {}]   ;;  %s2169_s2 = inlined_call_operand.vmem [shape: f32[32,8], index: 2, kind: input, shape index: {}]   ;;  %s2170_s3 = inlined_call_operand.vmem [shape: f32[8,32], index: 3, kind: input, shape index: {}]   ;;  %s2171_s4 = inlined_call_operand.vmem [shape: f32[1,8], index: 4, kind: input, shape index: {}]   ;;  %s2172_s5 = inlined_call_operand.vmem [shape: f32[8,1], index: 5, kind: input, shape index: {}]   ;;  %s2173_s6 = inlined_call_operand.vmem [shape: f32[4,256,8], index: 6, kind: output, shape index: {0}]   ;;  %s2174_s7 = inlined_call_operand.hbm [shape: f32[4,8,256], index: 7, kind: output, shape index: {1}]  }
   0x1   :  { %15 = vsyncpa [#allocation3 + $0x1], 0  ;;  %s1619_s24 = smov 0   ;;  %s1621_s25 = smov 0  }
   0x2   :  { %s1623_s26 = smov 0   ;;  %s1625_s27 = smov 0  }
   0x3   :  { %s1627_s28 = smov 0   ;;  %s1629_s29 = smov 0  }
   0x4   :  { %s1631_s30 = smov 0   ;;  %s1633_s8 = smov 0  }
   0x5 LB: > { %2178 = sst [smem:[#allocation5_spill]] %s1565_s30  ;;  %s1191_s9 = sadd.s32 4294967295, %s1569_s8   ;;  %s1569_s8 = sphi %s1633_s8, %s21_s8   ;;  %s1565_s30 = sphi %s1631_s30, %s2188_s30   ;;  %s1561_s29 = sphi %s1629_s29, %s2193_s29   ;;  %s1557_s28 = sphi %s1627_s28, %s2186_s28   ;;  %s1553_s27 = sphi %s1625_s27, %s2192_s27   ;;  %s1549_s26 = sphi %s1623_s26, %s2191_s26   ;;  %s1545_s25 = sphi %s1621_s25, %s2190_s25   ;;  %s1541_s24 = sphi %s1619_s24, %s2189_s24  }
   0x6   : > { %s1192_s10 = sadd.s32 4294967294, %s1569_s8   ;;  %s30_s11 = sadd.s32 1, %s1561_s29 }
   0x7   : > { %p31_p0 = scmp.ge.s32.totalorder %s30_s11, 2  ;;  %s33_s12 = sadd.s32 1, %s1565_s30 }
   0x8   : > { %p224_p1 = scmp.ne.s32.totalorder %s1549_s26, %s1545_s25  ;;  %p225_p2 = scmp.eq.s32.totalorder %s1191_s9, 7 }
   0x9   : > { %s2195_s11 = smov (%p31_p0, %s30_s11), 0  ;;  %s2197_s12 = smov (!%p31_p0, %s33_s12), %s1565_s30 }
   0xa   : > { %2179 = sst [smem:[#allocation6_spill]] %s2195_s11  ;;  %s210_s13 = ssub.s32 %s1561_s29, %s2195_s11 }
   0xb   : > { %p1670_p3 = por %p225_p2, %p224_p1  ;;  %p35_p4 = scmp.ge.s32.totalorder %s2197_s12, 4 }
   0xc   : > { %p230_p5 = scmp.ne.s32.totalorder %s1545_s25, %s1541_s24  ;;  %p231_p6 = scmp.eq.s32.totalorder %s1192_s10, 7 }
   0xd   : > { %p1197_p7 = scmp.ge.s32.totalorder %s1569_s8, 1  ;;  %s2199_s12 = smov (%p35_p4, %s2197_s12), 0 }
   0xe   : > { %2181 = sst [smem:[#allocation7_spill]] %s2199_s12  ;;  %p1679_p8 = por %p231_p6, %p230_p5 }
   0xf   : > { %p297_p9 = scmp.lt.s32.totalorder %s1569_s8, 9  ;;  %s209_s16 = ssub.s32 %s1565_s30, %s2199_s12 }
  0x10   : > { %s214_s17 = sadd.s32 1, %s1549_s26  ;;  %s211_s18 = sor.u32 %s210_s13, %s209_s16 }
  0x11   : > { %p298_p10 = pnand %p1197_p7, %p297_p9  ;;  %p212_p11 = scmp.eq.s32.totalorder %s211_s18, 0 }
  0x12   : > { %s1691_s20 = sshll.u32 (!%p298_p10), %s1553_s27, 4  ;;  %p361_p12 = scmp.lt.s32.totalorder (!%p298_p10), %s1557_s28, 3  ;;  %v727_v0 = vld [vmem:[%s2169_s2] sm:$0xff] (!%p298_p10)  ;;  %v728_v1 = vld [vmem:[%s2169_s2 + $0x8] sm:$0xff] (!%p298_p10)  ;;  %v729_v3 = vld [vmem:[%s2169_s2 + $0x10] sm:$0xff] (!%p298_p10)  ;;  %vm512_vm0 = vcmask (!%p298_p10), 1045504  }
  0x13   : > { %s1688_s19 = scalar_select %p212_p11, %s1549_s26, %s214_s17  }
  0x14   : > { %301 = sbr.rel (%p298_p10) target bundleno = 483 (0x1e3), region = 44  ;;  %p363_p13 = scmp.lt.s32.totalorder (!%p298_p10), %s1691_s20, 32  ;;  %v1355_v2 = vpack.c.bf16 (!%p298_p10), %v728_v1, %v727_v0  ;;  %v730_v4 = vld [vmem:[%s2169_s2 + $0x18] sm:$0xff] (!%p298_p10)  ;;  %vm430_vm1 = vcmask (!%p298_p10), 1046528   ;;  %v1571_v13 = vmov (!%p298_p10), 0.0|0.0   ;;  %vm594_vm2 = vcmask (!%p298_p10), 1044480  }
  0x15   : > { %v1359_v5 = vpack.c.bf16 (!%p298_p10), %v730_v4, %v729_v3  ;;  %s1250_s16 = sadd.s32 (!%p298_p10), 16, %s1691_s20  ;;  %1363 = vmatprep.subr.bf16.mxu1 (!%p298_p10), %v1571_v13  ;;  %s1572_s12 = smov (!%p298_p10), 16   ;;  %vm1575_vm3 = vmmov (!%p298_p10), 0   ;;  %vm676_vm4 = vcmask (!%p298_p10), 64512   ;;  %vm693_vm5 = vcmask (!%p298_p10), 130048  }
  0x16   : > { %1356 = vmatprep.subr.bf16.mxu0 (!%p298_p10), %v1355_v2  ;;  %p1738_p0 = scmp.lt.s32.totalorder (!%p298_p10), %s1250_s16, 32  ;;  %s1574_s18 = smov (!%p298_p10), 24   ;;  %vm710_vm6 = vcmask (!%p298_p10), 195584   ;;  %vm738_vm7 = vcmask (!%p298_p10), 261120  }
  0x17   : > { %1358 = vmatpush3.bf16.msra.mxu0 (!%p298_p10), %v1355_v2  ;;  %vm1962_vm8 = vmpackc.low (!%p298_p10), %vm738_vm7, %vm738_vm7  ;;  %p389_p1 = scmp.lt.s32.totalorder (!%p298_p10), %s1691_s20, 31 }
  0x18   : > { %1360 = vmatprep.subr.bf16.mxu0 (!%p298_p10), %v1359_v5 }
  0x1b   : > { %s1702_s10 = scalar_select %p361_p12, %s1557_s28, 3  ;;  %1362 = vmatpush3.bf16.msra.mxu0 %v1359_v5 }
  0x1c   : > { %s364_s13 = scalar_select %p363_p13, %s1691_s20, 32 }
  0x1d   : > { %s1395_s21 = smul.u32 33, %s1702_s10  ;;  %s2201_s16 = smov (!%p1738_p0, %s1250_s16), 32 }
  0x1e   : > { %s2203_s20 = smov (!%p389_p1, %s1691_s20), 31 }
  0x1f   : > { %s366_s22 = sadd.s32 %s1395_s21, %s364_s13  ;;  %s1573_s13 = smov 8  }
  0x20   : > { %s1200_s23 = sshll.u32 %s366_s22, 3  ;;  %s381_s17 = sadd.s32 %s1395_s21, %s2201_s16 }
  0x21   : > { %s1717_s30 = scalar_lea.vmem %s2167_s0, %s1200_s23  ;;  %s1202_s22 = sshll.u32 %s381_s17, 3 }
  0x22   : > { %v1721_v6 = vld [vmem:[%s1717_s30] sm:$0xff]  ;;  %v1724_v7 = vld [vmem:[%s1717_s30 + $0x8] sm:$0xff]  ;;  %v1727_v8 = vld [vmem:[%s1717_s30 + $0x10] sm:$0xff]  ;;  %s383_s9 = scalar_lea.vmem %s2168_s1, %s1202_s22  ;;  %s1241_s16 = sshll.u32 %s1557_s28, 1 }
  0x23   : > { %v513_v9 = vrot.slane %v1721_v6, 2  ;;  %v514_v10 = vrot.slane %v1724_v7, 2  ;;  %v431_v11 = vrot.slane %v1721_v6, 1  ;;  %v432_v12 = vrot.slane %v1724_v7, 1  ;;  %v1752_v23 = vld [vmem:[%s1717_s30 + $0x18] sm:$0xff]  ;;  %v1755_v24 = vld [vmem:[%s1717_s30 + $0x20] sm:$0xff]  ;;  %s1054_s11 = sadd.s32 %s1553_s27, %s1241_s16 }
  0x24   : > { %v516_v14 = vrot.slane %v1727_v8, 2  ;;  %v434_v15 = vrot.slane %v1727_v8, 1  ;;  %v596_v18 = vrot.slane %v1724_v7, 3  ;;  %v598_v21 = vrot.slane %v1727_v8, 3  ;;  %v1785_v37 = vld [vmem:[%s1717_s30 + $0x28] sm:$0xff]  ;;  %v1788_v38 = vld [vmem:[%s1717_s30 + $0x30] sm:$0xff] }
  0x25   : > { %v515_v16 = vsel %vm512_vm0, %v513_v9, %v514_v10  ;;  %v433_v17 = vsel %vm430_vm1, %v431_v11, %v432_v12  ;;  %v595_v22 = vrot.slane %v1721_v6, 3  ;;  %v436_v27 = vrot.slane %v1752_v23, 1  ;;  %v1791_v39 = vld [vmem:[%s1717_s30 + $0x78] sm:$0xff]  ;;  %v412_v40 = vld [vmem:[%s383_s9] sm:$0xff]  ;;  %s1578_s23 = smov [#allocation2]  }
  0x26   : > { %546 = vrot.lane.b32.xlu1 %v515_v16, %s1572_s12  ;;  %464 = vrot.lane.b32.xlu0 %v433_v17, %s1573_s13  ;;  %v517_v19 = vsel %vm512_vm0, %v514_v10, %v516_v14  ;;  %v435_v20 = vsel %vm430_vm1, %v432_v12, %v434_v15  ;;  %v599_v25 = vsel %vm594_vm2, %v596_v18, %v598_v21  ;;  %v438_v28 = vrot.slane %v1755_v24, 1  ;;  %v1830_v62 = vld [vmem:[%s1717_s30 + $0x38] sm:$0xff]  ;;  %v1833_v63 = vld [vmem:[%s1717_s30 + $0x40] sm:$0xff]  ;;  %s1479_s9 = sshll.u32 %s1578_s23, 4  ;;  %s1480_s9 = int_to_ptr.vmem [resolvable:$false] %s1479_s9 }
  0x27   : > { %v597_v26 = vsel %vm594_vm2, %v595_v22, %v596_v18  ;;  %v437_v30 = vsel %vm430_vm1, %v434_v15, %v436_v27  ;;  %v518_v31 = vrot.slane %v1752_v23, 2  ;;  %v520_v32 = vrot.slane %v1755_v24, 2  ;;  %v1854_v16 = vld [vmem:[%s1717_s30 + $0x48] sm:$0xff]  ;;  %v1857_v17 = vld [vmem:[%s1717_s30 + $0x50] sm:$0xff] }
  0x28   : > { %v439_v29 = vsel %vm430_vm1, %v436_v27, %v438_v28  ;;  %v600_v35 = vrot.slane %v1752_v23, 3  ;;  %v602_v36 = vrot.slane %v1755_v24, 3  ;;  %v440_v43 = vrot.slane %v1785_v37, 1 }
  0x29   : > { %v521_v33 = vsel %vm512_vm0, %v518_v31, %v520_v32  ;;  %v519_v34 = vsel %vm512_vm0, %v516_v14, %v518_v31  ;;  %v442_v44 = vrot.slane %v1788_v38, 1  ;;  %v460_v45 = vrot.slane %v1791_v39, 1 }
  0x2a   : > { %548 = vrot.lane.b32.xlu1 %v517_v19, %s1572_s12  ;;  %466 = vrot.lane.b32.xlu0 %v435_v20, %s1573_s13  ;;  %v603_v41 = vsel %vm594_vm2, %v600_v35, %v602_v36  ;;  %v601_v42 = vsel %vm594_vm2, %v598_v21, %v600_v35  ;;  %v462_v46 = vrot.slane %v412_v40, 1  ;;  %v542_v47 = vrot.slane %v1791_v39, 2 }
  0x2b   : > { %v544_v48 = vrot.slane %v412_v40, 2  ;;  %v624_v49 = vrot.slane %v1791_v39, 3  ;;  %v522_v50 = vrot.slane %v1785_v37, 2  ;;  %v626_v52 = vrot.slane %v412_v40, 3 }
  0x2c   : > { %v1808_v51 = vsel %vm430_vm1, %v460_v45, %v462_v46  ;;  %v443_v53 = vsel %vm430_vm1, %v440_v43, %v442_v44  ;;  %v441_v54 = vsel %vm430_vm1, %v438_v28, %v440_v43  ;;  %v524_v55 = vrot.slane %v1788_v38, 2 }
  0x2d   : > { %v1816_v56 = vsel %vm512_vm0, %v542_v47, %v544_v48  ;;  %v1821_v57 = vsel %vm594_vm2, %v624_v49, %v626_v52  ;;  %v523_v59 = vsel %vm512_vm0, %v520_v32, %v522_v50  ;;  %v604_v60 = vrot.slane %v1785_v37, 3  ;;  %v1878_v32 = vld [vmem:[%s1717_s30 + $0x58] sm:$0xff] }
  0x2e   : > { %630 = vrot.lane.b32.xlu1 %v599_v25, %s1574_s18  ;;  %628 = vrot.lane.b32.xlu0 %v597_v26, %s1574_s18  ;;  %v525_v58 = vsel %vm512_vm0, %v522_v50, %v524_v55  ;;  %v606_v61 = vrot.slane %v1788_v38, 3  ;;  %v444_v2 = vrot.slane %v1830_v62, 1  ;;  %v446_v3 = vrot.slane %v1833_v63, 1 }
  0x2f   : > { %v605_v1 = vsel %vm594_vm2, %v602_v36, %v604_v60  ;;  %v526_v9 = vrot.slane %v1830_v62, 2  ;;  %v528_v10 = vrot.slane %v1833_v63, 2  ;;  %v608_v14 = vrot.slane %v1830_v62, 3 }
  0x30   : > { %v607_v0 = vsel %vm594_vm2, %v604_v60, %v606_v61  ;;  %v447_v4 = vsel %vm430_vm1, %v444_v2, %v446_v3  ;;  %v445_v5 = vsel %vm430_vm1, %v442_v44, %v444_v2  ;;  %v610_v15 = vrot.slane %v1833_v63, 3 }
  0x31   : > { %v529_v11 = vsel %vm512_vm0, %v526_v9, %v528_v10  ;;  %v527_v12 = vsel %vm512_vm0, %v524_v55, %v526_v9  ;;  %v609_v19 = vsel %vm594_vm2, %v606_v61, %v608_v14  ;;  %v448_v20 = vrot.slane %v1854_v16, 1 }
  0x32   : > { %470 = vrot.lane.b32.xlu1 %v439_v29, %s1573_s13  ;;  %468 = vrot.lane.b32.xlu0 %v437_v30, %s1573_s13  ;;  %v611_v18 = vsel %vm594_vm2, %v608_v14, %v610_v15  ;;  %v450_v21 = vrot.slane %v1857_v17, 1  ;;  %v530_v26 = vrot.slane %v1854_v16, 2  ;;  %v532_v27 = vrot.slane %v1857_v17, 2 }
  0x33   : > { %v449_v25 = vsel %vm430_vm1, %v446_v3, %v448_v20  ;;  %v612_v30 = vrot.slane %v1854_v16, 3  ;;  %v614_v31 = vrot.slane %v1857_v17, 3  ;;  %v452_v36 = vrot.slane %v1878_v32, 1 }
  0x34   : > { %v451_v22 = vsel %vm430_vm1, %v448_v20, %v450_v21  ;;  %v533_v28 = vsel %vm512_vm0, %v530_v26, %v532_v27  ;;  %v531_v29 = vsel %vm512_vm0, %v528_v10, %v530_v26  ;;  %v534_v43 = vrot.slane %v1878_v32, 2 }
  0x35   : > { %v613_v35 = vsel %vm594_vm2, %v610_v15, %v612_v30  ;;  %v616_v50 = vrot.slane %v1878_v32, 3  ;;  %v1576_v14 = vmov 0.0  }
  0x36   : > { %552 = vrot.lane.b32.xlu1 %v521_v33, %s1572_s12  ;;  %550 = vrot.lane.b32.xlu0 %v519_v34, %s1572_s12  ;;  %v1881_v33 = vld [vmem:[%s1717_s30 + $0x60] sm:$0xff]  ;;  %v615_v34 = vsel %vm594_vm2, %v612_v30, %v614_v31  ;;  %v535_v48 = vsel %vm512_vm0, %v532_v27, %v534_v43 }
  0x37   : > { %v454_v40 = vrot.slane %v1881_v33, 1  ;;  %v536_v44 = vrot.slane %v1881_v33, 2  ;;  %v618_v52 = vrot.slane %v1881_v33, 3  ;;  %1352 = vmatprep.mubr.msk.f32.mxu1 %vm1575_vm3, %v1576_v14 }
  0x39   : > { %v537_v46 = vsel %vm512_vm0, %v534_v43, %v536_v44  ;;  %v619_v55 = vsel %vm594_vm2, %v616_v50, %v618_v52 }
  0x3a   : > { %634 = vrot.lane.b32.xlu1 %v603_v41, %s1574_s18  ;;  %632 = vrot.lane.b32.xlu0 %v601_v42, %s1574_s18  ;;  %v455_v41 = vsel %vm430_vm1, %v452_v36, %v454_v40  ;;  %v453_v42 = vsel %vm430_vm1, %v450_v21, %v452_v36 }
  0x3e   : > { %474 = vrot.lane.b32.xlu1 %v443_v53, %s1573_s13  ;;  %472 = vrot.lane.b32.xlu0 %v441_v54, %s1573_s13  ;;  %v1902_v53 = vld [vmem:[%s1717_s30 + $0x68] sm:$0xff]  ;;  %v1905_v54 = vld [vmem:[%s1717_s30 + $0x70] sm:$0xff] }
  0x3f   : > { %v458_v60 = vrot.slane %v1905_v54, 1  ;;  %v540_v2 = vrot.slane %v1905_v54, 2  ;;  %v622_v9 = vrot.slane %v1905_v54, 3 }
  0x41   : > { %v543_v15 = vsel %vm512_vm0, %v540_v2, %v542_v47  ;;  %v949_v47 = vld [vmem:[%s2172_s5] sm:$0xff] }
  0x42   : > { %556 = vrot.lane.b32.xlu1 %v525_v58, %s1572_s12  ;;  %554 = vrot.lane.b32.xlu0 %v523_v59, %s1572_s12  ;;  %v617_v58 = vsel %vm594_vm2, %v614_v31, %v616_v50  ;;  %v456_v59 = vrot.slane %v1902_v53, 1 }
  0x44   : > { %v459_v61 = vsel %vm430_vm1, %v456_v59, %v458_v60 }
  0x46   : > { %638 = vrot.lane.b32.xlu1 %v607_v0, %s1574_s18  ;;  %636 = vrot.lane.b32.xlu0 %v605_v1, %s1574_s18  ;;  %v457_v0 = vsel %vm430_vm1, %v454_v40, %v456_v59  ;;  %v538_v1 = vrot.slane %v1902_v53, 2 }
  0x48   : > { %v541_v3 = vsel %vm512_vm0, %v538_v1, %v540_v2 }
  0x4a   : > { %478 = vrot.lane.b32.xlu1 %v447_v4, %s1573_s13  ;;  %476 = vrot.lane.b32.xlu0 %v445_v5, %s1573_s13  ;;  %v539_v4 = vsel %vm512_vm0, %v536_v44, %v538_v1  ;;  %v620_v5 = vrot.slane %v1902_v53, 3 }
  0x4c   : > { %v623_v10 = vsel %vm594_vm2, %v620_v5, %v622_v9 }
  0x4e   : > { %560 = vrot.lane.b32.xlu1 %v529_v11, %s1572_s12  ;;  %558 = vrot.lane.b32.xlu0 %v527_v12, %s1572_s12  ;;  %v621_v11 = vsel %vm594_vm2, %v618_v52, %v620_v5  ;;  %v461_v12 = vsel %vm430_vm1, %v458_v60, %v460_v45  ;;  %v625_v45 = vsel %vm594_vm2, %v622_v9, %v624_v49 }
  0x52   : > { %642 = vrot.lane.b32.xlu1 %v611_v18, %s1574_s18  ;;  %640 = vrot.lane.b32.xlu0 %v609_v19, %s1574_s18  ;;  %v1577_v18 = vmov 0  }
  0x53   : > { %1474 = vset.pattern.permute.xlu0 %v1577_v18 }
  0x56   : > { %482 = vrot.lane.b32.xlu1 %v451_v22, %s1573_s13  ;;  %480 = vrot.lane.b32.xlu0 %v449_v25, %s1573_s13 }
  0x5a   : > { %564 = vrot.lane.b32.xlu1 %v533_v28, %s1572_s12  ;;  %562 = vrot.lane.b32.xlu0 %v531_v29, %s1572_s12 }
  0x5e   : > { %646 = vrot.lane.b32.xlu1 %v615_v34, %s1574_s18  ;;  %644 = vrot.lane.b32.xlu0 %v613_v35, %s1574_s18 }
  0x62   : > { %486 = vrot.lane.b32.xlu1 %v455_v41, %s1573_s13  ;;  %484 = vrot.lane.b32.xlu0 %v453_v42, %s1573_s13 }
  0x66   : > { %568 = vrot.lane.b32.xlu1 %v537_v46, %s1572_s12  ;;  %566 = vrot.lane.b32.xlu0 %v535_v48, %s1572_s12 }
  0x6a   : > { %650 = vrot.lane.b32.xlu1 %v619_v55, %s1574_s18  ;;  %648 = vrot.lane.b32.xlu0 %v617_v58, %s1574_s18 }
  0x6e   : > { %490 = vrot.lane.b32.xlu1 %v459_v61, %s1573_s13  ;;  %488 = vrot.lane.b32.xlu0 %v457_v0, %s1573_s13 }
  0x72   : > { %572 = vrot.lane.b32.xlu1 %v541_v3, %s1572_s12  ;;  %570 = vrot.lane.b32.xlu0 %v539_v4, %s1572_s12 }
  0x76   : > { %654 = vrot.lane.b32.xlu1 %v623_v10, %s1574_s18  ;;  %652 = vrot.lane.b32.xlu0 %v621_v11, %s1574_s18 }
  0x7a   : > { %494 = vrot.lane.b32.xlu1 %v1808_v51, %s1573_s13  ;;  %492 = vrot.lane.b32.xlu0 %v461_v12, %s1573_s13  ;;  %s1204_s13 = sshll.u32 %s1702_s10, 5 }
  0x7b   : > { %s392_s17 = sadd.s32 %s1204_s13, %s2203_s20  ;;  %s353_s20 = sand.u32 1, %s1545_s25  }
  0x7c   : > { %s1198_s10 = sshll.u32 %s353_s20, 3  ;;  %s1039_s27 = scalar_lea.sflag [#allocation3], %s353_s20 }
  0x7d   : > { %s355_s13 = scalar_lea.vmem [#allocation2], %s1198_s10 }
  0x7e   : > { %576 = vrot.lane.b32.xlu1 %v1816_v56, %s1572_s12  ;;  %574 = vrot.lane.b32.xlu0 %v543_v15, %s1572_s12  ;;  %s1242_s12 = sshll.u32 %s1054_s11, 7 }
  0x7f   : > { %s2114_s28 = scalar_lea.hbm %s2174_s7, %s1242_s12 }
  0x82   : > { %658 = vrot.lane.b32.xlu1 %v1821_v57, %s1574_s18  ;;  %656 = vrot.lane.b32.xlu0 %v625_v45, %s1574_s18  ;;  %s1205_s18 = sshll.u32 %s392_s17, 3  ;;  %s1058_s17 = sshll.u32 %s355_s13, 4  ;;  %s2116_s17 = int_to_ptr.vmem [resolvable:$true] %s1058_s17 }
  0x83   : > { %s2074_s30 = scalar_lea.vmem %s2173_s6, %s1205_s18  ;;  %s1475_s21 = scalar_lea.vmem %s2116_s17, 128 }
  0x84   : > { %p1476_p2 = scmp.ne.s32.totalorder %s2116_s17, %s1475_s21  ;;  %p1482_p6 = scmp.lt.s32.totalorder %s2116_s17, %s1480_s9 }
  0x86   : > { %952 = vperm.xlu0 %1474, %v949_v47   ;;  %p1477_p4 = pnand %p1476_p2, %p1670_p3 }
  0x88   : > { %p1478_p5 = pneg %p1477_p4 }
  0x98   : > { %v547_v51 = vpop.permute.xlu1 %546  ;;  %v465_v56 = vpop.permute.xlu0 %464 }
  0x99   : > { %v677_v49 = vsel %vm676_vm4, %v1721_v6, %v465_v56 }
  0x9a   : > { %v694_v26 = vsel %vm693_vm5, %v677_v49, %v547_v51 }
  0x9c   : > { %v549_v19 = vpop.permute.xlu1 %548  ;;  %v467_v20 = vpop.permute.xlu0 %466 }
  0x9d   : > { %v678_v21 = vsel %vm676_vm4, %v1724_v7, %v467_v20 }
  0x9e   : > { %v695_v22 = vsel %vm693_vm5, %v678_v21, %v549_v19 }
  0xa0   : > { %v631_v57 = vpop.permute.xlu1 %630  ;;  %v629_v25 = vpop.permute.xlu0 %628 }
  0xa1   : > { %v712_v27 = vsel %vm710_vm6, %v695_v22, %v631_v57  ;;  %v711_v28 = vsel %vm710_vm6, %v694_v26, %v629_v25 }
  0xa2   : > { %1296 = vmatprep.mubr.msk.f32.mxu0 %vm738_vm7, %v711_v28  ;;  %v1364_v7 = vpack.c.bf16 %v712_v27, %v711_v28 }
  0xa3   : > { %1297 = vmatmul.mubr.msk.f32.vlgmr.msra.gmra.mrb[0].mxu0 %vm738_vm7, %v712_v27 }
  0xa4   : > { %v471_v29 = vpop.permute.xlu1 %470  ;;  %1366 = vmatpush3.bf16.xpose.msk.msra.mxu1 %vm1962_vm8, %v1364_v7  ;;  %v469_v30 = vpop.permute.xlu0 %468 }
  0xa5   : > { %1367 = vmatprep.subr.bf16.mxu1 %v1571_v13  ;;  %v680_v35 = vsel %vm676_vm4, %v1752_v23, %v471_v29  ;;  %v679_v36 = vsel %vm676_vm4, %v1727_v8, %v469_v30 }
  0xa8   : > { %v553_v31 = vpop.permute.xlu1 %552  ;;  %v551_v34 = vpop.permute.xlu0 %550 }
  0xa9   : > { %v697_v40 = vsel %vm693_vm5, %v680_v35, %v553_v31  ;;  %v696_v41 = vsel %vm693_vm5, %v679_v36, %v551_v34 }
  0xac   : > { %v635_v42 = vpop.permute.xlu1 %634  ;;  %v633_v43 = vpop.permute.xlu0 %632 }
  0xad   : > { %v714_v44 = vsel %vm710_vm6, %v697_v40, %v635_v42  ;;  %v713_v46 = vsel %vm710_vm6, %v696_v41, %v633_v43 }
  0xae   : > { %v1368_v48 = vpack.c.bf16 %v714_v44, %v713_v46  ;;  %1299 = vmatprep.mubr.msk.f32.mxu0 %vm738_vm7, %v713_v46 }
  0xaf   : > { %1300 = vmatmul.mubr.msk.f32.gmra.mrb[2].mxu0 %vm738_vm7, %v714_v44 }
  0xb0   : > { %v475_v50 = vpop.permute.xlu1 %474  ;;  %1370 = vmatpush3.bf16.xpose.msk.msra.mxu1 %vm1962_vm8, %v1368_v48  ;;  %v473_v8 = vpop.permute.xlu0 %472 }
  0xb1   : > { %1371 = vmatprep.subr.bf16.mxu1 %v1571_v13  ;;  %v682_v55 = vsel %vm676_vm4, %v1785_v37, %v475_v50  ;;  %v681_v58 = vsel %vm676_vm4, %v1755_v24, %v473_v8 }
  0xb4   : > { %v557_v23 = vpop.permute.xlu1 %556  ;;  %v555_v52 = vpop.permute.xlu0 %554 }
  0xb5   : > { %v699_v59 = vsel %vm693_vm5, %v682_v55, %v557_v23  ;;  %v698_v60 = vsel %vm693_vm5, %v681_v58, %v555_v52 }
  0xb8   : > { %v639_v61 = vpop.permute.xlu1 %638  ;;  %v637_v0 = vpop.permute.xlu0 %636 }
  0xb9   : > { %v716_v1 = vsel %vm710_vm6, %v699_v59, %v639_v61  ;;  %v715_v2 = vsel %vm710_vm6, %v698_v60, %v637_v0 }
  0xba   : > { %v1372_v3 = vpack.c.bf16 %v716_v1, %v715_v2  ;;  %1302 = vmatprep.mubr.msk.f32.mxu0 %vm738_vm7, %v715_v2 }
  0xbb   : > { %1303 = vmatmul.mubr.msk.f32.gmra.mrb[4].mxu0 %vm738_vm7, %v716_v1 }
  0xbc   : > { %v479_v4 = vpop.permute.xlu1 %478  ;;  %1374 = vmatpush3.bf16.xpose.msk.msra.mxu1 %vm1962_vm8, %v1372_v3  ;;  %v477_v24 = vpop.permute.xlu0 %476 }
  0xbd   : > { %1375 = vmatprep.subr.bf16.mxu1 %v1571_v13  ;;  %v684_v9 = vsel %vm676_vm4, %v1830_v62, %v479_v4  ;;  %v683_v10 = vsel %vm676_vm4, %v1788_v38, %v477_v24 }
  0xc0   : > { %v561_v37 = vpop.permute.xlu1 %560  ;;  %v559_v5 = vpop.permute.xlu0 %558 }
  0xc1   : > { %v701_v11 = vsel %vm693_vm5, %v684_v9, %v561_v37  ;;  %v700_v12 = vsel %vm693_vm5, %v683_v10, %v559_v5 }
  0xc4   : > { %v643_v14 = vpop.permute.xlu1 %642  ;;  %v641_v15 = vpop.permute.xlu0 %640 }
  0xc5   : > { %v718_v45 = vsel %vm710_vm6, %v701_v11, %v643_v14  ;;  %v717_v18 = vsel %vm710_vm6, %v700_v12, %v641_v15 }
  0xc6   : > { %v1376_v47 = vpack.c.bf16 %v718_v45, %v717_v18  ;;  %1305 = vmatprep.mubr.msk.f32.mxu0 %vm738_vm7, %v717_v18 }
  0xc7   : > { %1306 = vmatmul.mubr.msk.f32.gmra.mrb[6].mxu0 %vm738_vm7, %v718_v45 }
  0xc8   : > { %v483_v51 = vpop.permute.xlu1 %482  ;;  %1378 = vmatpush3.bf16.xpose.msk.msra.mxu1 %vm1962_vm8, %v1376_v47  ;;  %v481_v38 = vpop.permute.xlu0 %480 }
  0xc9   : > { %1379 = vmatprep.subr.bf16.mxu1 %v1571_v13  ;;  %v686_v19 = vsel %vm676_vm4, %v1854_v16, %v483_v51  ;;  %v685_v20 = vsel %vm676_vm4, %v1833_v63, %v481_v38 }
  0xcc   : > { %v565_v62 = vpop.permute.xlu1 %564  ;;  %v563_v56 = vpop.permute.xlu0 %562 }
  0xcd   : > { %v703_v49 = vsel %vm693_vm5, %v686_v19, %v565_v62  ;;  %v702_v21 = vsel %vm693_vm5, %v685_v20, %v563_v56 }
  0xd0   : > { %v647_v57 = vpop.permute.xlu1 %646  ;;  %v645_v22 = vpop.permute.xlu0 %644 }
  0xd1   : > { %v720_v25 = vsel %vm710_vm6, %v703_v49, %v647_v57  ;;  %v719_v26 = vsel %vm710_vm6, %v702_v21, %v645_v22 }
  0xd2   : > { %v1380_v27 = vpack.c.bf16 %v720_v25, %v719_v26  ;;  %1308 = vmatprep.mubr.msk.f32.mxu0 %vm738_vm7, %v719_v26 }
  0xd3   : > { %1309 = vmatmul.mubr.msk.f32.gmra.mrb[8].mxu0 %vm738_vm7, %v720_v25 }
  0xd4   : > { %v487_v28 = vpop.permute.xlu1 %486  ;;  %1382 = vmatpush3.bf16.xpose.msk.msra.mxu1 %vm1962_vm8, %v1380_v27  ;;  %v485_v63 = vpop.permute.xlu0 %484 }
  0xd5   : > { %1383 = vmatprep.subr.bf16.mxu1 %v1571_v13  ;;  %v688_v29 = vsel %vm676_vm4, %v1878_v32, %v487_v28  ;;  %v687_v30 = vsel %vm676_vm4, %v1857_v17, %v485_v63 }
  0xd8   : > { %v569_v16 = vpop.permute.xlu1 %568  ;;  %v567_v7 = vpop.permute.xlu0 %566 }
  0xd9   : > { %v705_v31 = vsel %vm693_vm5, %v688_v29, %v569_v16  ;;  %v704_v34 = vsel %vm693_vm5, %v687_v30, %v567_v7 }
  0xdc   : > { %v651_v35 = vpop.permute.xlu1 %650  ;;  %v649_v36 = vpop.permute.xlu0 %648 }
  0xdd   : > { %v722_v40 = vsel %vm710_vm6, %v705_v31, %v651_v35  ;;  %v721_v41 = vsel %vm710_vm6, %v704_v34, %v649_v36 }
  0xde   : > { %v1384_v42 = vpack.c.bf16 %v722_v40, %v721_v41  ;;  %1311 = vmatprep.mubr.msk.f32.mxu0 %vm738_vm7, %v721_v41 }
  0xdf   : > { %1312 = vmatmul.mubr.msk.f32.gmra.mrb[10].mxu0 %vm738_vm7, %v722_v40 }
  0xe0   : > { %v491_v43 = vpop.permute.xlu1 %490  ;;  %1386 = vmatpush3.bf16.xpose.msk.msra.mxu1 %vm1962_vm8, %v1384_v42  ;;  %v489_v17 = vpop.permute.xlu0 %488 }
  0xe1   : > { %1387 = vmatprep.subr.bf16.mxu1 %v1571_v13  ;;  %v690_v46 = vsel %vm676_vm4, %v1902_v53, %v491_v43  ;;  %v689_v48 = vsel %vm676_vm4, %v1881_v33, %v489_v17 }
  0xe4   : > { %v573_v32 = vpop.permute.xlu1 %572  ;;  %v571_v44 = vpop.permute.xlu0 %570 }
  0xe5   : > { %v707_v50 = vsel %vm693_vm5, %v690_v46, %v573_v32  ;;  %v706_v8 = vsel %vm693_vm5, %v689_v48, %v571_v44 }
  0xe8   : > { %v655_v23 = vpop.permute.xlu1 %654  ;;  %v653_v52 = vpop.permute.xlu0 %652 }
  0xe9   : > { %v724_v55 = vsel %vm710_vm6, %v707_v50, %v655_v23  ;;  %v723_v58 = vsel %vm710_vm6, %v706_v8, %v653_v52 }
  0xea   : > { %v1388_v59 = vpack.c.bf16 %v724_v55, %v723_v58  ;;  %1314 = vmatprep.mubr.msk.f32.mxu0 %vm738_vm7, %v723_v58 }
  0xeb   : > { %1315 = vmatmul.mubr.msk.f32.gmra.mrb[12].mxu0 %vm738_vm7, %v724_v55 }
  0xec   : > { %v495_v60 = vpop.permute.xlu1 %494  ;;  %1390 = vmatpush3.bf16.xpose.msk.msra.mxu1 %vm1962_vm8, %v1388_v59  ;;  %v493_v33 = vpop.permute.xlu0 %492 }
  0xed   : > { %1391 = vmatprep.subr.bf16.mxu1 %v1571_v13  ;;  %v692_v0 = vsel %vm676_vm4, %v1791_v39, %v495_v60  ;;  %v691_v1 = vsel %vm676_vm4, %v1905_v54, %v493_v33  ;;  %v948_v39 = vld [vmem:[%s2170_s3] sm:$0xff] }
  0xee   : > { %v1206_v54 = vld [vmem:[%s2171_s4] ss:$0 sm:$0xff] }
  0xf0   : > { %v577_v53 = vpop.permute.xlu1 %576  ;;  %v575_v61 = vpop.permute.xlu0 %574 }
  0xf1   : > { %v709_v2 = vsel %vm693_vm5, %v692_v0, %v577_v53  ;;  %v708_v3 = vsel %vm693_vm5, %v691_v1, %v575_v61 }
  0xf4   : > { %v659_v4 = vpop.permute.xlu1 %658  ;;  %v657_v24 = vpop.permute.xlu0 %656 }
  0xf5   : > { %v726_v37 = vsel %vm710_vm6, %v709_v2, %v659_v4  ;;  %v725_v13 = vsel %vm710_vm6, %v708_v3, %v657_v24 }
  0xf6   : > { %v1392_v5 = vpack.c.bf16 %v726_v37, %v725_v13  ;;  %1317 = vmatprep.mubr.msk.f32.mxu0 %vm738_vm7, %v725_v13 }
  0xf7   : > { %1318 = vmatmul.mubr.msk.f32.gmra.mrb[14].mxu0 %vm738_vm7, %v726_v37 }
  0xf8   : > { %1394 = vmatpush3.bf16.xpose.msk.msra.mxu1 %vm1962_vm8, %v1392_v5 }
  0xff   : > { %1353 = vmatmul.mubr.msk.f32.vlgmr.msra.gmra.mrb[0].mxu1 %vm738_vm7, %v948_v39 }
 0x105   : > { %v953_v36 = vpop.permute.xlu0 %952 }
 0x176   : > { %v1298_v6 = vpop.f32.mrb[0].mxu0 }
 0x177   : > { %v859_v9 = vadd.f32 %v1298_v6, %v1206_v54  ;;  %v853_v10 = vpop.f32.mrb[1].mxu0 }
 0x178   : > { %v854_v11 = vadd.f32 %v1206_v54, %v853_v10 }
 0x179   : > { %933 = vst.msk [vmem:[%s2074_s30 + $0x8] sm:$0xff] %vm676_vm4, %v859_v9 }
 0x17a   : > { %932 = vst.msk [vmem:[%s2074_s30] sm:$0xff] %vm676_vm4, %v854_v11 }
 0x182   : > { %v1301_v12 = vpop.f32.mrb[2].mxu0 }
 0x183   : > { %v869_v14 = vadd.f32 %v1301_v12, %v1206_v54  ;;  %v863_v15 = vpop.f32.mrb[3].mxu0 }
 0x184   : > { %v864_v45 = vadd.f32 %v1206_v54, %v863_v15 }
 0x185   : > { %935 = vst.msk [vmem:[%s2074_s30 + $0x18] sm:$0xff] %vm676_vm4, %v869_v14 }
 0x186   : > { %934 = vst.msk [vmem:[%s2074_s30 + $0x10] sm:$0xff] %vm676_vm4, %v864_v45 }
 0x18e   : > { %v1304_v18 = vpop.f32.mrb[4].mxu0 }
 0x18f   : > { %v879_v47 = vadd.f32 %v1304_v18, %v1206_v54  ;;  %v873_v51 = vpop.f32.mrb[5].mxu0 }
 0x190   : > { %v874_v38 = vadd.f32 %v1206_v54, %v873_v51 }
 0x191   : > { %937 = vst.msk [vmem:[%s2074_s30 + $0x28] sm:$0xff] %vm676_vm4, %v879_v47 }
 0x192   : > { %936 = vst.msk [vmem:[%s2074_s30 + $0x20] sm:$0xff] %vm676_vm4, %v874_v38 }
 0x19a   : > { %v1307_v62 = vpop.f32.mrb[6].mxu0 }
 0x19b   : > { %v889_v56 = vadd.f32 %v1307_v62, %v1206_v54  ;;  %v883_v19 = vpop.f32.mrb[7].mxu0 }
 0x19c   : > { %v884_v20 = vadd.f32 %v1206_v54, %v883_v19 }
 0x19d   : > { %939 = vst.msk [vmem:[%s2074_s30 + $0x38] sm:$0xff] %vm676_vm4, %v889_v56 }
 0x19e   : > { %938 = vst.msk [vmem:[%s2074_s30 + $0x30] sm:$0xff] %vm676_vm4, %v884_v20 }
 0x1a6   : > { %v1310_v49 = vpop.f32.mrb[8].mxu0 }
 0x1a7   : > { %v899_v21 = vadd.f32 %v1310_v49, %v1206_v54  ;;  %v893_v57 = vpop.f32.mrb[9].mxu0 }
 0x1a8   : > { %v894_v22 = vadd.f32 %v1206_v54, %v893_v57 }
 0x1a9   : > { %941 = vst.msk [vmem:[%s2074_s30 + $0x48] sm:$0xff] %vm676_vm4, %v899_v21 }
 0x1aa   : > { %940 = vst.msk [vmem:[%s2074_s30 + $0x40] sm:$0xff] %vm676_vm4, %v894_v22 }
 0x1b2   : > { %v1313_v25 = vpop.f32.mrb[10].mxu0 }
 0x1b3   : > { %v909_v26 = vadd.f32 %v1313_v25, %v1206_v54  ;;  %v903_v27 = vpop.f32.mrb[11].mxu0 }
 0x1b4   : > { %v904_v28 = vadd.f32 %v1206_v54, %v903_v27 }
 0x1b5   : > { %943 = vst.msk [vmem:[%s2074_s30 + $0x58] sm:$0xff] %vm676_vm4, %v909_v26 }
 0x1b6   : > { %942 = vst.msk [vmem:[%s2074_s30 + $0x50] sm:$0xff] %vm676_vm4, %v904_v28 }
 0x1be   : > { %v1316_v63 = vpop.f32.mrb[12].mxu0 }
 0x1bf   : > { %v919_v16 = vadd.f32 %v1316_v63, %v1206_v54  ;;  %v913_v7 = vpop.f32.mrb[13].mxu0 }
 0x1c0   : > { %v914_v29 = vadd.f32 %v1206_v54, %v913_v7 }
 0x1c1   : > { %945 = vst.msk [vmem:[%s2074_s30 + $0x68] sm:$0xff] %vm676_vm4, %v919_v16 }
 0x1c2   : > { %944 = vst.msk [vmem:[%s2074_s30 + $0x60] sm:$0xff] %vm676_vm4, %v914_v29 }
 0x1ca   : > { %v1319_v30 = vpop.f32.mrb[14].mxu0 }
 0x1cb   : > { %v929_v31 = vadd.f32 %v1319_v30, %v1206_v54  ;;  %v923_v34 = vpop.f32.mrb[15].mxu0 }
 0x1cc   : > { %v924_v35 = vadd.f32 %v1206_v54, %v923_v34 }
 0x1cd   : > { %947 = vst.msk [vmem:[%s2074_s30 + $0x78] sm:$0xff] %vm676_vm4, %v929_v31 }
 0x1ce   : > { %946 = vst.msk [vmem:[%s2074_s30 + $0x70] sm:$0xff] %vm676_vm4, %v924_v35  ;;  %s1481_s30 = scalar_lea.vmem %s1480_s9, 256 }
 0x1cf   : > { %p1483_p7 = scmp.lt.s32.totalorder %s1481_s30, %s1475_s21 }
 0x1d1   : > { %p1484_p9 = por %p1483_p7, %p1482_p6 }
 0x1d2   : > { %v1024_v40 = vpop.f32.mrb[0].mxu1 }
 0x1d3   : > { %v1025_v41 = vadd.f32 %v1024_v40, %v953_v36  ;;  %v1354_v42 = vpop.f32.mrb[1].mxu1  ;;  %p1485_p10 = pnand %p1484_p9, %p1478_p5 }
 0x1d5   : > { %1028 = vst [vmem:[%s355_s13] sm:$0xff] %v1025_v41 }
 0x1d6   : > { %1488 = shalt.err (!%p1485_p10)
}
 0x1d7   : > { %s1489_s20 = scalar_lea.hbm %s2114_s28, 128  ;;  %s1493_s11 = scalar_lea.hbm %s2174_s7, 1024 }
 0x1d8   : > { %p1490_p11 = scmp.ne.s32.totalorder %s2114_s28, %s1489_s20  ;;  %p1494_p0 = scmp.lt.u32.totalorder %s2114_s28, %s2174_s7 }
 0x1d9   : > { %p1495_p1 = scmp.lt.u32.totalorder %s1493_s11, %s1489_s20  ;;  %p1497_p4 = scmp.lt.u32.totalorder %s1489_s20, %s2114_s28 }
 0x1da   : > { %p1491_p12 = pnand %p1490_p11, %p1670_p3 }
 0x1db   : > { %p1496_p2 = por %p1495_p1, %p1494_p0 }
 0x1dc   : > { %p1492_p13 = pneg %p1491_p12 }
 0x1dd   : > { %p1498_p5 = por %p1497_p4, %p1496_p2 }
 0x1df   : > { %p1499_p6 = pnand %p1498_p5, %p1492_p13 }
 0x1e1   : > { %1502 = shalt.err (!%p1499_p6)
}
 0x1e2   : > { %1396 = dma.vmem_to_hbm [thread:$0]  (%p1670_p3), %s2116_s17, 128, %s2114_s28, %s1039_s27  }
 0x1e3 PF: > { %p1402_p7 = scmp.ge.s32.totalorder %s1569_s8, 2  ;;  %s1082_s18 = sand.u32 1, %s1541_s24  }
 0x1e4   : > { %s1083_s22 = scalar_lea.sflag [#allocation3], %s1082_s18 }
 0x1e5   : > { %p1399_p9 = pnand %p1402_p7, %p1679_p8 }
 0x1e7   : > { %1536 = dma.done.wait (!%p1399_p9), %s1083_s22, 128  }
 0x1e8   : > { %1538 = vsyncadd (!%p1399_p9), %s1083_s22, 4294967168  ;;  %s21_s8 = sadd.s32 1, %s1569_s8   ;;  %s2186_s28 = sld [smem:[#allocation5_spill]] }
 0x1e9   : > { %p18_p10 = scmp.ge.s32.totalorder %s21_s8, 10   ;;  %s2187_s14 = sld [smem:[#allocation6_spill]] }
 0x1ea   : > { %s2188_s30 = sld [smem:[#allocation7_spill]]  ;;  %s2189_s24 = smov %s1545_s25 }
 0x1eb   : > { %s2190_s25 = smov %s1549_s26  ;;  %s2191_s26 = smov %s1688_s19 }
 0x1ec   : > { %s2192_s27 = smov %s1561_s29  ;;  %20 = sbr.rel (!%p18_p10) target bundleno = 5 (0x5), region = 94 }
 0x1ef   : > { %s2193_s29 = smov %s2187_s14 }
 0x1f3   :  { %1088 = vsyncpa [#allocation3], 1 }
 0x1f4   :  { %1090 = vsyncpa [#allocation3 + $0x1], 1 }

</bundles_post_ra>
